<compile_context>
chip_gen: v6e
topology: v6e:2x2x1
jax: 0.10.0
libtpu: 0.0.40
codegen_flags: <defaults>
</compile_context>

<pallas_src>
import functools

import jax
import jax.numpy as jnp
from jax.experimental import pallas as pl
from jax.experimental.pallas import tpu as pltpu


def _bn_pad_kernel(scale_ref, shift_ref, x_ref, o_ref, *, p):
    # scale/shift: (cb, 1, 1) f32 blocks (per-channel)
    # x:           (bb, cb, H,  W )
    # o:           (bb, cb, Hp, Wp)
    bb, cb, H, W = x_ref.shape

    # bf16 inputs: FMA in bf16 (free on v6e/v7x VPU); everything else in f32.
    cdt = x_ref.dtype if x_ref.dtype == jnp.bfloat16 else jnp.float32

    scale = scale_ref[...][None].astype(cdt)      # (1, cb, 1, 1) -- hoisted
    shift = shift_ref[...][None].astype(cdt)      # (1, cb, 1, 1)

    x = x_ref[...].astype(cdt)                    # (bb, cb, H, W)
    if p > 0:
        # Zero-pad the block in registers (sublane then lane concatenate).
        zrow = jnp.zeros((bb, cb, p, W), cdt)
        x = jnp.concatenate([zrow, x, zrow], axis=2)        # (bb, cb, Hp, W)
        zcol = jnp.zeros((bb, cb, H + 2 * p, p), cdt)
        x = jnp.concatenate([zcol, x, zcol], axis=3)        # (bb, cb, Hp, Wp)

    # Border: 0 * scale + shift == shift == (bias - mean*weight*inv_std),
    # i.e. exactly the module's pad value, so interior and border are covered
    # by a single aligned full-block store.
    o_ref[...] = (x * scale + shift).astype(o_ref.dtype)


def _round_up(x, m):
    return (x + m - 1) // m * m


def _padded_block_bytes(shape, dtype):
    """VMEM footprint of one block, including (sublane, 128) tile padding."""
    itemsize = jnp.dtype(dtype).itemsize
    sublane = max(8, 32 // itemsize)          # 8 for f32, 16 for bf16, 32 for i8
    *lead_dims, s, l = shape
    lead = 1
    for d in lead_dims:
        lead *= d
    return lead * _round_up(max(s, 1), sublane) * _round_up(max(l, 1), 128) * itemsize


def _pick_block_sizes(B, C, H, W, p, dtype, budget_bytes=10 << 20, min_steps=4):
    """(bb, cb, est_vmem_bytes): largest divisor blocks whose *padded*,
    double-buffered footprint fits the budget, while keeping >= min_steps grid
    steps (megacore + DMA/compute overlap) when the problem has that much
    batch*channel parallelism."""
    Hp, Wp = H + 2 * p, W + 2 * p

    def cost(bb, cb):
        in_b = _padded_block_bytes((bb, cb, H, W), dtype)
        out_b = _padded_block_bytes((bb, cb, Hp, Wp), dtype)
        par_b = 2 * _padded_block_bytes((cb, 1, 1), jnp.float32)   # scale + shift
        # f32/bf16 compute intermediate (padded block before downcast), 1 copy.
        tmp_b = _padded_block_bytes((bb, cb, Hp, Wp), jnp.float32)
        return 2 * (in_b + out_b + par_b) + tmp_b                  # x2: double-buffered

    div_C = [d for d in range(1, C + 1) if C % d == 0]
    div_B = [d for d in range(1, B + 1) if B % d == 0]

    cb = max([d for d in div_C if cost(1, d) <= budget_bytes], default=1)
    bb = max([d for d in div_B if cost(d, cb) <= budget_bytes], default=1)

    def steps(bb_, cb_):
        return (B // bb_) * (C // cb_)

    while steps(bb, cb) < min_steps and (bb > 1 or cb > 1):
        if bb > 1:
            bb = max(d for d in div_B if d < bb)
        else:
            cb = max(d for d in div_C if d < cb)

    return bb, cb, cost(bb, cb)


def bn_and_pad(x, weight, bias, running_mean, running_var, *,
               eps=1e-5, pad_pixels=1, affine=True):
    """Forward pass of BNAndPadLayer (inference-mode BatchNorm2d + pad)."""
    B, C, H, W = x.shape
    p = int(pad_pixels)
    Hp, Wp = H + 2 * p, W + 2 * p

    inv_std = 1.0 / jnp.sqrt(running_var.astype(jnp.float32) + eps)
    if affine:
        scale = weight.astype(jnp.float32) * inv_std
        shift = bias.astype(jnp.float32) - running_mean.astype(jnp.float32) * scale
    else:
        scale = inv_std
        shift = -running_mean.astype(jnp.float32) * inv_std
    # In both branches the module's pad value equals `shift`, so no separate
    # pad_vals input is needed.

    scale3 = scale.reshape(C, 1, 1)
    shift3 = shift.reshape(C, 1, 1)

    bb, cb, est_bytes = _pick_block_sizes(B, C, H, W, p, x.dtype)
    grid = (C // cb, B // bb)   # channel slow, batch fast: scale/shift stay resident

    # Only override the scoped-VMEM limit if even the minimal block exceeds
    # the conservative budget (e.g. a single enormous image).
    vmem_limit = None
    if est_bytes > (10 << 20):
        vmem_limit = min(int(est_bytes * 1.25), 64 << 20)

    kernel = functools.partial(_bn_pad_kernel, p=p)

    return pl.pallas_call(
        kernel,
        out_shape=jax.ShapeDtypeStruct((B, C, Hp, Wp), x.dtype),
        grid=grid,
        in_specs=[
            pl.BlockSpec((cb, 1, 1), lambda ci, bi: (ci, 0, 0)),          # scale
            pl.BlockSpec((cb, 1, 1), lambda ci, bi: (ci, 0, 0)),          # shift
            pl.BlockSpec((bb, cb, H, W), lambda ci, bi: (bi, ci, 0, 0)),  # x
        ],
        out_specs=pl.BlockSpec((bb, cb, Hp, Wp), lambda ci, bi: (bi, ci, 0, 0)),
        compiler_params=pltpu.CompilerParams(
            dimension_semantics=("parallel", "parallel"),
            vmem_limit_bytes=vmem_limit),
    )(scale3, shift3, x)


def bn_and_pad_ref(x, weight, bias, running_mean, running_var, *,
                   eps=1e-5, pad_pixels=1, affine=True):
    """Pure-JAX reference matching the PyTorch forward (eval mode)."""
    inv_std = 1.0 / jnp.sqrt(running_var + eps)
    y = (x - running_mean[None, :, None, None]) * inv_std[None, :, None, None]
    if affine:
        y = y * weight[None, :, None, None] + bias[None, :, None, None]
        pad_vals = bias - running_mean * weight * inv_std
    else:
        pad_vals = -running_mean * inv_std
    p = pad_pixels
    if p > 0:
        y = jnp.pad(y, ((0, 0), (0, 0), (p, p), (p, p)))
        pv = pad_vals[None, :, None, None]
        y = y.at[:, :, 0:p, :].set(pv)
        y = y.at[:, :, -p:, :].set(pv)
        y = y.at[:, :, :, 0:p].set(pv)
        y = y.at[:, :, :, -p:].set(pv)
    return y


if __name__ == "__main__":
    key = jax.random.PRNGKey(0)
    k_x, k_w, k_b, k_m, k_v = jax.random.split(key, 5)

    B, C, H, W = 2, 4, 16, 16
    pad_pixels = 1
    eps = 1e-5

    x = jax.random.normal(k_x, (B, C, H, W), dtype=jnp.float32)
    # Deterministic synthetic BN parameters / running stats.
    weight = 1.0 + 0.1 * jax.random.normal(k_w, (C,), dtype=jnp.float32)
    bias = 0.1 * jax.random.normal(k_b, (C,), dtype=jnp.float32)
    running_mean = 0.05 * jax.random.normal(k_m, (C,), dtype=jnp.float32)
    running_var = 1.0 + 0.1 * jnp.abs(jax.random.normal(k_v, (C,), dtype=jnp.float32))

    # affine=True (standard path)
    out = bn_and_pad(x, weight, bias, running_mean, running_var,
                     eps=eps, pad_pixels=pad_pixels, affine=True)
    out = jax.block_until_ready(out)
    ref = bn_and_pad_ref(x, weight, bias, running_mean, running_var,
                         eps=eps, pad_pixels=pad_pixels, affine=True)
    assert out.shape == (B, C, H + 2 * pad_pixels, W + 2 * pad_pixels), out.shape
    assert jnp.allclose(out, ref, atol=1e-5, rtol=1e-5), float(
        jnp.max(jnp.abs(out - ref)))

    # affine=False (pad value = -running_mean * inv_std)
    out_na = bn_and_pad(x, None, None, running_mean, running_var,
                        eps=eps, pad_pixels=pad_pixels, affine=False)
    out_na = jax.block_until_ready(out_na)
    ref_na = bn_and_pad_ref(x, weight, bias, running_mean, running_var,
                            eps=eps, pad_pixels=pad_pixels, affine=False)
    assert jnp.allclose(out_na, ref_na, atol=1e-5, rtol=1e-5), float(
        jnp.max(jnp.abs(out_na - ref_na)))

    # TODO(synk): training-mode BatchNorm (batch statistics + running-stat
    # updates) is intentionally not implemented; the module's pad_values only
    # match BN output in eval mode.

    print("KERNEL_OK")
</pallas_src>

<mosaic_0001>
module attributes {stable_mosaic.version = 11 : i64} {
  func.func @_bn_pad_kernel(%arg0: i32, %arg1: i32, %arg2: memref<2x1x1xf32, #tpu.memory_space<vmem>>, %arg3: memref<2x1x1xf32, #tpu.memory_space<vmem>>, %arg4: memref<1x2x16x16xf32, #tpu.memory_space<vmem>>, %arg5: memref<1x2x18x18xf32, #tpu.memory_space<vmem>>) attributes {dimension_semantics = [#tpu.dimension_semantics<parallel>, #tpu.dimension_semantics<parallel>], iteration_bounds = array<i64: 2, 2>, scalar_prefetch = 0 : i64, scratch_operands = 0 : i64, tpu.core_type = #tpu.core_type<tc>, window_params = [{transform_indices = @transform_0, window_bounds = array<i64: 2, 1, 1>}, {transform_indices = @transform_1, window_bounds = array<i64: 2, 1, 1>}, {transform_indices = @transform_2, window_bounds = array<i64: 1, 2, 16, 16>}, {transform_indices = @transform_3, window_bounds = array<i64: 1, 2, 18, 18>}]} {
    %c0 = arith.constant 0 : index
    %c0_0 = arith.constant 0 : index
    %c0_1 = arith.constant 0 : index
    %0 = vector.load %arg2[%c0, %c0_0, %c0_1] : memref<2x1x1xf32, #tpu.memory_space<vmem>>, vector<2x1x1xf32>
    %1 = vector.shape_cast %0 : vector<2x1x1xf32> to vector<1x2x1x1xf32>
    %c0_2 = arith.constant 0 : index
    %c0_3 = arith.constant 0 : index
    %c0_4 = arith.constant 0 : index
    %2 = vector.load %arg3[%c0_2, %c0_3, %c0_4] : memref<2x1x1xf32, #tpu.memory_space<vmem>>, vector<2x1x1xf32>
    %3 = vector.shape_cast %2 : vector<2x1x1xf32> to vector<1x2x1x1xf32>
    %c0_5 = arith.constant 0 : index
    %c0_6 = arith.constant 0 : index
    %c0_7 = arith.constant 0 : index
    %c0_8 = arith.constant 0 : index
    %4 = vector.load %arg4[%c0_5, %c0_6, %c0_7, %c0_8] : memref<1x2x16x16xf32, #tpu.memory_space<vmem>>, vector<1x2x16x16xf32>
    %cst = arith.constant 0.000000e+00 : f32
    %5 = vector.broadcast %cst : f32 to vector<1x2x1x16xf32>
    %6 = tpu.concatenate %5, %4, %5 in 2 : vector<1x2x1x16xf32>, vector<1x2x16x16xf32>, vector<1x2x1x16xf32> -> vector<1x2x18x16xf32>
    %cst_9 = arith.constant 0.000000e+00 : f32
    %7 = vector.broadcast %cst_9 : f32 to vector<1x2x18x1xf32>
    %8 = tpu.concatenate %7, %6, %7 in 3 : vector<1x2x18x1xf32>, vector<1x2x18x16xf32>, vector<1x2x18x1xf32> -> vector<1x2x18x18xf32>
    %9 = vector.broadcast %1 : vector<1x2x1x1xf32> to vector<1x2x18x18xf32>
    %10 = arith.mulf %8, %9 : vector<1x2x18x18xf32>
    %11 = vector.broadcast %3 : vector<1x2x1x1xf32> to vector<1x2x18x18xf32>
    %12 = arith.addf %10, %11 : vector<1x2x18x18xf32>
    %c0_10 = arith.constant 0 : index
    %c0_11 = arith.constant 0 : index
    %c0_12 = arith.constant 0 : index
    %c0_13 = arith.constant 0 : index
    %13 = vector.load %arg5[%c0_10, %c0_11, %c0_12, %c0_13] : memref<1x2x18x18xf32, #tpu.memory_space<vmem>>, vector<1x2x18x18xf32>
    tpu.vector_store %arg5[%c0_10, %c0_11, %c0_12, %c0_13], %12 {strides = array<i32>} : memref<1x2x18x18xf32, #tpu.memory_space<vmem>>, vector<1x2x18x18xf32>,
    return
  }
  func.func @transform_0(%arg0: i32, %arg1: i32) -> (i32, i32, i32) {
    %c0_i32 = arith.constant 0 : i32
    %c0_i32_0 = arith.constant 0 : i32
    %c0_i32_1 = arith.constant 0 : i32
    return %arg0, %c0_i32, %c0_i32_0 : i32, i32, i32
  }
  func.func @transform_1(%arg0: i32, %arg1: i32) -> (i32, i32, i32) {
    %c0_i32 = arith.constant 0 : i32
    %c0_i32_0 = arith.constant 0 : i32
    %c0_i32_1 = arith.constant 0 : i32
    return %arg0, %c0_i32, %c0_i32_0 : i32, i32, i32
  }
  func.func @transform_2(%arg0: i32, %arg1: i32) -> (i32, i32, i32, i32) {
    %c0_i32 = arith.constant 0 : i32
    %c0_i32_0 = arith.constant 0 : i32
    %c0_i32_1 = arith.constant 0 : i32
    return %arg1, %arg0, %c0_i32, %c0_i32_0 : i32, i32, i32, i32
  }
  func.func @transform_3(%arg0: i32, %arg1: i32) -> (i32, i32, i32, i32) {
    %c0_i32 = arith.constant 0 : i32
    %c0_i32_0 = arith.constant 0 : i32
    %c0_i32_1 = arith.constant 0 : i32
    return %arg1, %arg0, %c0_i32, %c0_i32_0 : i32, i32, i32, i32
  }
}

</mosaic_0001>

<bundles_post_ra>
// kernel: tpu_custom_call.1
= control target key start
LH: loop header
LB: loop body
LE: loop exit
PB: predicated region body
PF: predicated region fallthrough
CT: control target
= control target key end

     0   :  { %8 = vsyncpa [#allocation3], 0  ;;  %s880_s0 = inlined_call_operand.vmem [shape: f32[4,1,1], index: 0, kind: input, shape index: {}]   ;;  %s881_s1 = inlined_call_operand.vmem [shape: f32[4,1,1], index: 1, kind: input, shape index: {}]   ;;  %s882_s2 = inlined_call_operand.hbm [shape: f32[2,4,16,16], index: 2, kind: input, shape index: {}]   ;;  %s883_s3 = inlined_call_operand.vmem [shape: f32[2,4,18,18], index: 3, kind: output, shape index: {}]  }
   0x1   :  { %10 = vsyncpa [#allocation3 + $0x1], 0  ;;  %s723_s12 = smov 0   ;;  %s725_s13 = smov 0  }
   0x2   :  { %s727_s14 = smov 0   ;;  %s729_s15 = smov 0  }
   0x3   :  { %s731_s16 = smov 0   ;;  %s733_s17 = smov 0  }
   0x4   :  { %s735_s18 = smov 0   ;;  %s737_s19 = smov 0  }
   0x5 LB: > { %s501_s20 = sadd.s32 4294967295, %s696_s19   ;;  %s25_s21 = sadd.s32 1, %s688_s17  ;;  %s696_s19 = sphi %s737_s19, %s16_s19   ;;  %s692_s18 = sphi %s735_s18, %s893_s18   ;;  %s688_s17 = sphi %s733_s17, %s892_s17   ;;  %s684_s16 = sphi %s731_s16, %s891_s16   ;;  %s680_s15 = sphi %s729_s15, %s890_s15   ;;  %s676_s14 = sphi %s727_s14, %s889_s14   ;;  %s672_s13 = sphi %s725_s13, %s888_s13   ;;  %s668_s12 = sphi %s723_s12, %s887_s12  }
   0x6   : > { %p26_p0 = scmp.ge.s32.totalorder %s25_s21, 2  ;;  %s28_s22 = sadd.s32 1, %s692_s18 }
   0x7   : > { %s89_s23 = sadd.s32 1, %s676_s14  ;;  %p96_p1 = scmp.ne.s32.totalorder %s676_s14, %s672_s13 }
   0x8   : > { %s895_s21 = smov (%p26_p0, %s25_s21), 0  ;;  %s897_s22 = smov (!%p26_p0, %s28_s22), %s692_s18 }
   0x9   : > { %s84_s24 = ssub.s32 %s688_s17, %s895_s21  ;;  %p97_p2 = scmp.eq.s32.totalorder %s696_s19, 0 }
   0xa   : > { %p30_p3 = scmp.ge.s32.totalorder %s897_s22, 2  ;;  %p102_p4 = scmp.ne.s32.totalorder %s672_s13, %s668_s12 }
   0xb   : > { %p774_p5 = por %p97_p2, %p96_p1  ;;  %p103_p6 = scmp.eq.s32.totalorder %s501_s20, 0 }
   0xc   : > { %s899_s22 = smov (%p30_p3, %s897_s22), 0  ;;  %p531_p8 = scmp.lt.s32.totalorder %s696_s19, 4 }
   0xd   : > { %p780_p7 = por %p103_p6, %p102_p4  ;;  %s85_s27 = ssub.s32 %s692_s18, %s899_s22 }
   0xe   : > { %s86_s28 = sor.u32 %s85_s27, %s84_s24  ;;  %s170_s29 = sand.u32 1, %s676_s14  }
   0xf   : > { %p87_p9 = scmp.eq.s32.totalorder %s86_s28, 0  ;;  %s505_s30 = sshll.u32 %s170_s29, 5 }
  0x10   : > { %s522_s4 = sshll.u32 %s692_s18, 2  ;;  %s508_s6 = sshll.u32 %s688_s17, 3 }
  0x11   : > { %s790_s5 = scalar_select %p87_p9, %s676_s14, %s89_s23  }
  0x12   : > { %s181_s7 = sadd.s32 %s522_s4, %s508_s6  ;;  %s174_s8 = scalar_lea.vmem [#allocation2], %s505_s30 }
  0x13   : > { %s184_s9 = sshll.u32 %s174_s8, 4  ;;  %s509_s10 = sshll.u32 %s181_s7, 7  ;;  %s185_s9 = int_to_ptr.vmem [resolvable:$true] %s184_s9 }
  0x14   : > { %s183_s20 = scalar_lea.hbm %s882_s2, %s509_s10  ;;  %p800_p10 = pnand %p531_p8, %p774_p5 }
  0x15   : > { %p510_p11 = scmp.ge.s32.totalorder %s696_s19, 1  ;;  %s171_s23 = scalar_lea.sflag [#allocation3], %s170_s29 }
  0x16   : > { %p604_p12 = pneg %p800_p10  ;;  %s615_s27 = scalar_lea.vmem %s185_s9, 512 }
  0x17   : > { %p616_p13 = scmp.ne.s32.totalorder %s185_s9, %s615_s27  ;;  %s698_s28 = smov [#allocation2]  }
  0x18   : > { %s620_s30 = sshll.u32 %s698_s28, 4  ;;  %s621_s30 = int_to_ptr.vmem [resolvable:$false] %s620_s30 }
  0x19   : > { %p618_p0 = pnand %p616_p13, %p604_p12  ;;  %s622_s4 = scalar_lea.vmem %s621_s30, 1024 }
  0x1a   : > { %p623_p2 = scmp.lt.s32.totalorder %s185_s9, %s621_s30  ;;  %p624_p3 = scmp.lt.s32.totalorder %s622_s4, %s615_s27 }
  0x1b   : > { %p619_p1 = pneg %p618_p0 }
  0x1c   : > { %p625_p4 = por %p624_p3, %p623_p2 }
  0x1e   : > { %p626_p5 = pnand %p625_p4, %p619_p1 }
  0x20   : > { %629 = shalt.err (!%p626_p5)
}
  0x21   : > { %s699_s25 = smov 128   ;;  %s700_s29 = smov 8  }
  0x22   : > { %530 = dma.hbm_to_vmem [thread:$0]  (!%p800_p10), %s183_s20, 512, %s185_s9, %s171_s23, %s699_s25, %s699_s25, %s700_s29  }
  0x23   : > { %p192_p6 = scmp.lt.s32.totalorder %s696_s19, 5 }
  0x25   : > { %p193_p8 = pnand %p510_p11, %p192_p6 }
  0x26   : > { %s198_s6 = sand.u32 (!%p193_p8), 1, %s672_s13  }
  0x27   : > { %196 = sbr.rel (%p193_p8) target bundleno = 199 (0xc7), region = 32  ;;  %s511_s7 = sshll.u32 (!%p193_p8), %s198_s6, 5 }
  0x28   : > { %s199_s8 = scalar_lea.sflag (!%p193_p8), [#allocation3], %s198_s6  ;;  %s202_s10 = scalar_lea.vmem (!%p193_p8), [#allocation2], %s511_s7 }
  0x2c   : > { %663 = dma.done.wait (%p780_p7), %s199_s8, 512  }
  0x2d   : > { %665 = vsyncadd (%p780_p7), %s199_s8, 4294966784  ;;  %s512_s11 = sshll.u32 %s684_s16, 1  ;;  %v701_v0 = vmov 0   ;;  %v264_v3 = vld [vmem:[%s202_s10] sm:$0xff]  ;;  %v265_v4 = vld [vmem:[%s202_s10 + $0x8] sm:$0xff]  ;;  %vm272_vm0 = vcmask 1040384  }
  0x2e   : > { %601 = vset.pattern.permute.xlu1 %v701_v0  ;;  %600 = vset.pattern.permute.xlu0 %v701_v0  ;;  %p239_p9 = scmp.lt.s32.totalorder %s512_s11, 3  ;;  %v273_v7 = vrot.slane %v264_v3, 7  ;;  %v274_v8 = vrot.slane %v265_v4, 7  ;;  %v266_v9 = vld [vmem:[%s202_s10 + $0x10] sm:$0xff]  ;;  %v267_v13 = vld [vmem:[%s202_s10 + $0x18] sm:$0xff]  ;;  %s702_s16 = smov 1  }
  0x2f   : > { %v276_v12 = vrot.slane %v266_v9, 7  ;;  %v277_v16 = vrot.slane %v267_v13, 7  ;;  %p250_p7 = scmp.lt.s32.totalorder %s680_s15, 1  ;;  %vm309_vm1 = vcmask 7168   ;;  %vm316_vm2 = vcmask 138240  }
  0x30   : > { %s901_s11 = smov (!%p239_p9, %s512_s11), 3  ;;  %v275_v10 = vsel %vm272_vm0, %v273_v7, %v274_v8  ;;  %v283_v11 = vsel %vm272_vm0, 0.0, %v273_v7  ;;  %v285_v15 = vsel %vm272_vm0, %v274_v8, 0.0  ;;  %vm371_vm3 = vcmask 146432  }
  0x31   : > { %s246_s20 = scalar_lea.vmem %s881_s1, %s901_s11  ;;  %s241_s27 = scalar_lea.vmem %s880_s0, %s901_s11  ;;  %v284_v14 = vsel %vm272_vm0, 0.0, %v276_v12  ;;  %v286_v17 = vsel %vm272_vm0, %v277_v16, 0.0  ;;  %v278_v18 = vsel %vm272_vm0, %v276_v12, %v277_v16  ;;  %vm374_vm4 = vcmask 140288  }
  0x32   : > { %v518_v1 = vld [vmem:[%s246_s20] ss:$0 sm:$0xff]  ;;  %v519_v5 = vld [vmem:[%s246_s20 + $0x1] ss:$0 sm:$0xff]  ;;  %s903_s15 = smov (!%p250_p7, %s680_s15), 1  ;;  %s523_s28 = smul.u32 3, %s901_s11 }
  0x33   : > { %v516_v2 = vld [vmem:[%s241_s27] ss:$0 sm:$0xff]  ;;  %358 = vperm.xlu1 %601, %v518_v1   ;;  %v517_v6 = vld [vmem:[%s241_s27 + $0x1] ss:$0 sm:$0xff]  ;;  %s524_s26 = smul.u32 12, %s903_s15 }
  0x34   : > { %334 = vperm.xlu0 %600, %v516_v2  }
  0x35   : > { %s256_s30 = sadd.s32 %s524_s26, %s523_s28 }
  0x36   : > { %s515_s4 = sshll.u32 %s256_s30, 3 }
  0x37   : > { %362 = vperm.xlu1 %601, %v519_v5   ;;  %s258_s29 = scalar_lea.vmem %s883_s3, %s515_s4 }
  0x38   : > { %338 = vperm.xlu0 %600, %v517_v6  }
  0x3b   : > { %293 = vrot.lane.b32.xlu1 %v275_v10, %s702_s16 }
  0x3c   : > { %291 = vrot.lane.b32.xlu0 %v283_v11, %s702_s16 }
  0x3f   : > { %297 = vrot.lane.b32.xlu1 %v284_v14, %s702_s16 }
  0x40   : > { %295 = vrot.lane.b32.xlu0 %v285_v15, %s702_s16 }
  0x43   : > { %301 = vrot.lane.b32.xlu1 %v286_v17, %s702_s16 }
  0x44   : > { %299 = vrot.lane.b32.xlu0 %v278_v18, %s702_s16 }
  0xae   : > { %v359_v19 = vpop.permute.xlu1 %358 }
  0xaf   : > { %v335_v20 = vpop.permute.xlu0 %334 }
  0xb2   : > { %v363_v21 = vpop.permute.xlu1 %362 }
  0xb3   : > { %v339_v22 = vpop.permute.xlu0 %338 }
  0xb6   : > { %v294_v23 = vpop.permute.xlu1 %293 }
  0xb7   : > { %v292_v24 = vpop.permute.xlu0 %291  ;;  %v311_v25 = vsel %vm309_vm1, 0.0, %v294_v23 }
  0xb8   : > { %v310_v26 = vsel %vm309_vm1, 0.0, %v292_v24  ;;  %v318_v27 = vsel %vm316_vm2, %v311_v25, 0.0 }
  0xb9   : > { %v317_v28 = vsel %vm316_vm2, %v310_v26, 0.0  ;;  %v342_v29 = vmul.f32 %v335_v20, %v318_v27 }
  0xba   : > { %v341_v30 = vmul.f32 %v335_v20, %v317_v28  ;;  %v298_v31 = vpop.permute.xlu1 %297 }
  0xbb   : > { %v296_v32 = vpop.permute.xlu0 %295  ;;  %v366_v33 = vadd.f32 %v359_v19, %v342_v29  ;;  %v313_v35 = vsel %vm309_vm1, 0.0, %v298_v31 }
  0xbc   : > { %v365_v34 = vadd.f32 %v359_v19, %v341_v30  ;;  %v312_v36 = vsel %vm309_vm1, 0.0, %v296_v32  ;;  %v320_v37 = vsel %vm316_vm2, %v313_v35, 0.0 }
  0xbd   : > { %v319_v38 = vsel %vm316_vm2, %v312_v36, 0.0  ;;  %373 = vst.msk [vmem:[%s258_s29 + $0x8] sm:$0xff] %vm371_vm3, %v366_v33  ;;  %v344_v39 = vmul.f32 %v339_v22, %v320_v37 }
  0xbe   : > { %372 = vst.msk [vmem:[%s258_s29] sm:$0xff] %vm371_vm3, %v365_v34  ;;  %v343_v40 = vmul.f32 %v335_v20, %v319_v38  ;;  %v302_v41 = vpop.permute.xlu1 %301 }
  0xbf   : > { %v300_v42 = vpop.permute.xlu0 %299  ;;  %v368_v43 = vadd.f32 %v363_v21, %v344_v39  ;;  %v315_v45 = vsel %vm309_vm1, 0.0, %v302_v41 }
  0xc0   : > { %v367_v44 = vadd.f32 %v359_v19, %v343_v40  ;;  %v314_v46 = vsel %vm309_vm1, 0.0, %v300_v42  ;;  %v322_v47 = vsel %vm316_vm2, %v315_v45, 0.0 }
  0xc1   : > { %v321_v48 = vsel %vm316_vm2, %v314_v46, 0.0  ;;  %376 = vst.msk [vmem:[%s258_s29 + $0x18] sm:$0xff] %vm371_vm3, %v368_v43  ;;  %v346_v49 = vmul.f32 %v339_v22, %v322_v47 }
  0xc2   : > { %375 = vst.msk [vmem:[%s258_s29 + $0x10] sm:$0x3] %vm374_vm4, %v367_v44  ;;  %v345_v50 = vmul.f32 %v339_v22, %v321_v48 }
  0xc3   : > { %v370_v51 = vadd.f32 %v363_v21, %v346_v49 }
  0xc4   : > { %v369_v52 = vadd.f32 %v363_v21, %v345_v50 }
  0xc5   : > { %378 = vst.msk [vmem:[%s258_s29 + $0x28] sm:$0x3] %vm374_vm4, %v370_v51 }
  0xc6   : > { %377 = vst.msk [vmem:[%s258_s29 + $0x20] sm:$0xff] %vm371_vm3, %v369_v52 }
  0xc7 PF: > { %s16_s19 = sadd.s32 1, %s696_s19   ;;  %s887_s12 = smov %s672_s13 }
  0xc8   : > { %p13_p10 = scmp.ge.s32.totalorder %s16_s19, 6   ;;  %s888_s13 = smov %s676_s14 }
  0xc9   : > { %s889_s14 = smov %s790_s5  ;;  %s890_s15 = smov %s688_s17 }
  0xca   : > { %s891_s16 = smov %s692_s18  ;;  %s892_s17 = smov %s895_s21 }
  0xcb   : > { %s893_s18 = smov %s899_s22  ;;  %15 = sbr.rel (!%p13_p10) target bundleno = 5 (0x5), region = 78 }
  0xd0   :  { %411 = vsyncpa [#allocation3], 1 }
  0xd1   :  { %413 = vsyncpa [#allocation3 + $0x1], 1 }

</bundles_post_ra>
